<compile_context>
chip_gen: v7x
topology: tpu7x:2x2x1
jax: 0.10.0
libtpu: 0.0.40
codegen_flags: <defaults>
</compile_context>

<pallas_src>
import functools

import jax
import jax.numpy as jnp
import numpy as np
from jax.experimental import pallas as pl
from jax.experimental.pallas import tpu as pltpu


def attention_kernel(dh_ref, enc_ref, wa_wt_ref, ua_wt_ref, bias_ref, va_row_ref,
                     ctx_ref, attn_ref, *, s_actual, elem_dtype):
    BB, S_pad, H = enc_ref.shape
    dh = dh_ref[...]                     # (BB, H)        matmul dtype (bf16 fast path)
    enc = enc_ref[...]                   # (BB, S_pad, H) matmul dtype

    # Wa projection for the whole batch tile; (wa_b + ua_b) folded into one f32 bias.
    dh_proj = jnp.dot(dh, wa_wt_ref[...],
                      preferred_element_type=jnp.float32) + bias_ref[...]            # (BB, H)

    # Ua projection as a single (BB*S_pad, H) @ (H, H) MXU matmul.  S_pad is a sublane
    # multiple, so the reshape round-trip is a free relayout (no extra VMEM copy).
    enc_proj = jnp.dot(enc.reshape(BB * S_pad, H), ua_wt_ref[...],
                       preferred_element_type=jnp.float32).reshape(BB, S_pad, H)      # (BB,S,H)

    # Elementwise / tanh path: bf16 on v6e/v7x (bf16 VPU+EUP), f32 on v5e.
    t = jnp.tanh((enc_proj + dh_proj[:, None, :]).astype(elem_dtype))                 # (BB,S,H)

    # Lane-dense scores: VPU multiply with the Va row + lane reduction over H,
    # accumulated in f32.  The Va bias is dropped: softmax is shift-invariant.
    scores = jnp.sum(t * va_row_ref[...], axis=-1, dtype=jnp.float32)                 # (BB, S_pad)

    if s_actual != S_pad:
        # Mask padded sequence positions out of the softmax.
        pos = jax.lax.broadcasted_iota(jnp.int32, (BB, S_pad), 1)
        scores = jnp.where(pos < s_actual, scores, -1e30)

    # Softmax over the sequence axis on the lane-dense layout; exact divide (the (BB,1)
    # reciprocal is not on the critical path, keeps parity with the PyTorch module tight).
    m = jnp.max(scores, axis=-1, keepdims=True)                                       # (BB, 1)
    e = jnp.exp(scores - m)                                                            # (BB, S_pad)
    w = e / jnp.sum(e, axis=-1, keepdims=True)                                         # (BB, S_pad)

    # context = sum_s w * enc : VPU multiply + sublane (XLU) reduction on data already in
    # VMEM — avoids BB separate M=1 MXU matmuls and their push/pop latency tail.
    wm = w.astype(elem_dtype)
    ctx = jnp.sum(wm[:, :, None] * enc, axis=1, dtype=jnp.float32)                     # (BB, H)

    attn_ref[...] = w
    ctx_ref[...] = ctx


def _device_kind():
    try:
        return jax.devices()[0].device_kind.lower()
    except Exception:
        return ""


def _has_bf16_vpu(kind):
    # v6e / v7x have bf16 VPU+EUP; v5e (and older) do not -> bf16 elementwise only adds casts.
    return any(tag in kind for tag in ("v6", "v7", "6e", "7x"))


def _tpu_vmem_capacity_bytes():
    try:
        cap = int(pltpu.get_tpu_info().vmem_capacity_bytes)
        if cap > 0:
            return cap
    except Exception:
        pass
    kind = _device_kind()
    if "v7" in kind or "7x" in kind:
        return 64 << 20     # v7x: 64 MiB per TensorCore
    return 128 << 20        # v5e / v6e


def _round_up_to(x, m):
    return ((x + m - 1) // m) * m


def _block_footprint_bytes(bb, s_pad, h, mm_bytes, ew_bytes):
    """Rough steady-state VMEM footprint of one batch tile (weights excluded)."""
    enc_stream = 2 * bb * s_pad * h * mm_bytes                 # enc block, double-buffered
    temps = bb * s_pad * h * (4 + ew_bytes)                    # enc_proj (f32) + tanh temp
    small = 2 * (bb * h * mm_bytes + bb * h * 4 + bb * s_pad * 4)  # dh in + ctx/attn out (x2)
    return enc_stream + temps + small


def _pick_batch_block(B, s_pad, H, *, budget_bytes, mm_bytes, ew_bytes):
    """Largest batch tile that fits the VMEM budget; multiple of 8; >=2 grid steps if B>8."""
    if B <= 8:
        return B
    per_row = max(_block_footprint_bytes(1, s_pad, H, mm_bytes, ew_bytes), 1)
    bb = max(8, min(B, budget_bytes // per_row))
    bb = (bb // 8) * 8
    # Keep at least 2 grid steps so dimension_semantics=('parallel',) can shard across
    # v7x's two TensorCores; harmless no-op on single-TC v5e/v6e.
    bb = min(bb, _round_up_to(pl.cdiv(B, 2), 8))
    return int(max(8, min(B, bb)))


def simple_attention(decoder_hidden, encoder_outputs, params, *,
                     matmul_dtype=jnp.bfloat16, elementwise_dtype=None):
    B, H = decoder_hidden.shape
    _, S, _ = encoder_outputs.shape
    wa_w, wa_b, ua_w, ua_b, va_w, va_b = params
    del va_b  # softmax(x + c) == softmax(x): the Va bias has no effect on either output.

    kind = _device_kind()
    if elementwise_dtype is None:
        elementwise_dtype = jnp.bfloat16 if _has_bf16_vpu(kind) else jnp.float32

    # Pad S to a sublane multiple: the in-kernel (BB,S,H)<->(BB*S,H) reshape becomes a
    # free relayout and the enc tile is (8,128)-friendly; padding is masked in-kernel.
    S_pad = _round_up_to(S, 8)
    if S_pad != S:
        encoder_outputs = jnp.pad(encoder_outputs, ((0, 0), (0, S_pad - S), (0, 0)))

    # Wrapper glue (fused by XLA): pre-transpose torch (out, in) weights, fold biases,
    # cast the streaming/matmul operands, keep the Va weight as a lane row.
    wa_wt = wa_w.T.astype(matmul_dtype)                      # (H, H)
    ua_wt = ua_w.T.astype(matmul_dtype)                      # (H, H)
    bias = (wa_b + ua_b).reshape(1, H).astype(jnp.float32)   # (1, H)
    va_row = va_w.reshape(1, H).astype(elementwise_dtype)    # (1, H)
    dh = decoder_hidden.astype(matmul_dtype)
    enc = encoder_outputs.astype(matmul_dtype)

    mm_bytes = jnp.dtype(matmul_dtype).itemsize
    ew_bytes = jnp.dtype(elementwise_dtype).itemsize

    # Generation-aware VMEM sizing: budget = scoped ceiling - weight blocks - headroom.
    cap = _tpu_vmem_capacity_bytes()
    ceiling = int(min(cap - (8 << 20), 112 << 20))           # ~56 MiB on v7x, ~112 on v5e/v6e
    weight_bytes = 2 * H * H * mm_bytes + 4 * H * 4          # Wa^T + Ua^T (Buffered(1)) + bias/va
    budget = max(ceiling - weight_bytes - (4 << 20), 4 << 20)

    BB = _pick_batch_block(B, S_pad, H, budget_bytes=budget,
                           mm_bytes=mm_bytes, ew_bytes=ew_bytes)
    grid = (pl.cdiv(B, BB),)

    # Request only the VMEM this launch actually needs (with margin), clamped to the
    # per-generation ceiling, so small problems never over-request on v7x.
    needed = weight_bytes + _block_footprint_bytes(BB, S_pad, H, mm_bytes, ew_bytes)
    vmem_limit = int(min(ceiling, max(2 * needed, 32 << 20)))

    kernel = functools.partial(attention_kernel, s_actual=S, elem_dtype=elementwise_dtype)

    ctx2d, attn2d = pl.pallas_call(
        kernel,
        grid=grid,
        in_specs=[
            pl.BlockSpec((BB, H), lambda b: (b, 0)),               # decoder_hidden tile
            pl.BlockSpec((BB, S_pad, H), lambda b: (b, 0, 0)),     # encoder_outputs tile
            pl.BlockSpec((H, H), lambda b: (0, 0),
                         pipeline_mode=pl.Buffered(1)),            # Wa^T (grid-invariant)
            pl.BlockSpec((H, H), lambda b: (0, 0),
                         pipeline_mode=pl.Buffered(1)),            # Ua^T (grid-invariant)
            pl.BlockSpec((1, H), lambda b: (0, 0),
                         pipeline_mode=pl.Buffered(1)),            # wa_b + ua_b
            pl.BlockSpec((1, H), lambda b: (0, 0),
                         pipeline_mode=pl.Buffered(1)),            # Va row
        ],
        out_specs=[
            pl.BlockSpec((BB, H), lambda b: (b, 0)),               # context, lane-dense
            pl.BlockSpec((BB, S_pad), lambda b: (b, 0)),           # attention weights
        ],
        out_shape=[
            jax.ShapeDtypeStruct((B, H), jnp.float32),
            jax.ShapeDtypeStruct((B, S_pad), jnp.float32),
        ],
        compiler_params=pltpu.CompilerParams(
            dimension_semantics=("parallel",),
            vmem_limit_bytes=vmem_limit,
        ),
    )(dh, enc, wa_wt, ua_wt, bias, va_row)

    # Restore PyTorch output shapes (cheap wrapper-side slice/reshape).
    context_vector = ctx2d.reshape(B, 1, H)
    attention_weights = attn2d[:, :S].reshape(B, S, 1)
    return context_vector, attention_weights


def reference(dh, enc, params):
    # Pure-JAX mirror of the PyTorch forward (f32), for correctness checking only.
    wa_w, wa_b, ua_w, ua_b, va_w, va_b = params
    dh_e = dh[:, None, :]                                          # (B, 1, H)
    pre = jnp.tanh(dh_e @ wa_w.T + wa_b + enc @ ua_w.T + ua_b)     # (B, S, H)
    scores = pre @ va_w.T + va_b                                   # (B, S, 1)
    w = jax.nn.softmax(scores, axis=1)                             # (B, S, 1)
    ctx = jnp.einsum('bso,bsh->boh', w, enc)                       # (B, 1, H)
    return ctx, w


if __name__ == "__main__":
    B, S, H = 2, 5, 4
    key = jax.random.PRNGKey(0)
    k1, k2, k3, k4, k5, k6, k7, k8 = jax.random.split(key, 8)

    # Deterministic nn.Linear-style init: U(-1/sqrt(in), 1/sqrt(in)).
    bound = 1.0 / np.sqrt(H)
    wa_w = jax.random.uniform(k1, (H, H), jnp.float32, -bound, bound)
    wa_b = jax.random.uniform(k2, (H,), jnp.float32, -bound, bound)
    ua_w = jax.random.uniform(k3, (H, H), jnp.float32, -bound, bound)
    ua_b = jax.random.uniform(k4, (H,), jnp.float32, -bound, bound)
    va_w = jax.random.uniform(k5, (1, H), jnp.float32, -bound, bound)
    va_b = jax.random.uniform(k6, (1,), jnp.float32, -bound, bound)
    params = (wa_w, wa_b, ua_w, ua_b, va_w, va_b)

    decoder_hidden = jax.random.normal(k7, (B, H), jnp.float32)
    encoder_outputs = jax.random.normal(k8, (B, S, H), jnp.float32)

    ctx_ref, attn_ref = reference(decoder_hidden, encoder_outputs, params)

    # 1) Exact-parity check: full-f32 path (exact divide -> tight tolerance).
    ctx32, attn32 = simple_attention(decoder_hidden, encoder_outputs, params,
                                     matmul_dtype=jnp.float32,
                                     elementwise_dtype=jnp.float32)
    jax.block_until_ready((ctx32, attn32))
    assert ctx32.shape == (B, 1, H) and attn32.shape == (B, S, 1)
    np.testing.assert_allclose(np.asarray(ctx32), np.asarray(ctx_ref), rtol=1e-5, atol=1e-5)
    np.testing.assert_allclose(np.asarray(attn32), np.asarray(attn_ref), rtol=1e-5, atol=1e-5)

    # 2) Optimized default path: bf16 matmul operands (+ bf16 elementwise on v6e/v7x).
    #    Tolerance is loose because the reference is f32 while the kernel streams bf16.
    ctx, attn = simple_attention(decoder_hidden, encoder_outputs, params)
    jax.block_until_ready((ctx, attn))
    assert ctx.shape == (B, 1, H) and attn.shape == (B, S, 1)
    np.testing.assert_allclose(np.asarray(ctx), np.asarray(ctx_ref), rtol=5e-2, atol=5e-2)
    np.testing.assert_allclose(np.asarray(attn), np.asarray(attn_ref), rtol=5e-2, atol=5e-2)

    print("KERNEL_OK")
</pallas_src>

<mosaic_0001>
module attributes {stable_mosaic.version = 11 : i64} {
  func.func @attention_kernel(%arg0: i32, %arg1: memref<2x4xf32, #tpu.memory_space<vmem>>, %arg2: memref<2x8x4xf32, #tpu.memory_space<vmem>>, %arg3: memref<4x4xf32, #tpu.memory_space<vmem>>, %arg4: memref<4x4xf32, #tpu.memory_space<vmem>>, %arg5: memref<1x4xf32, #tpu.memory_space<vmem>>, %arg6: memref<1x4xf32, #tpu.memory_space<vmem>>, %arg7: memref<2x4xf32, #tpu.memory_space<vmem>>, %arg8: memref<2x8xf32, #tpu.memory_space<vmem>>) attributes {dimension_semantics = [#tpu.dimension_semantics<parallel>], iteration_bounds = array<i64: 1>, scalar_prefetch = 0 : i64, scratch_operands = 0 : i64, tpu.core_type = #tpu.core_type<tc>, window_params = [{transform_indices = @transform_0, window_bounds = array<i64: 2, 4>}, {transform_indices = @transform_1, window_bounds = array<i64: 2, 8, 4>}, {pipeline_mode = #tpu.pipeline_mode<synchronous>, transform_indices = @transform_2, window_bounds = array<i64: 4, 4>}, {pipeline_mode = #tpu.pipeline_mode<synchronous>, transform_indices = @transform_3, window_bounds = array<i64: 4, 4>}, {pipeline_mode = #tpu.pipeline_mode<synchronous>, transform_indices = @transform_4, window_bounds = array<i64: 1, 4>}, {pipeline_mode = #tpu.pipeline_mode<synchronous>, transform_indices = @transform_5, window_bounds = array<i64: 1, 4>}, {transform_indices = @transform_6, window_bounds = array<i64: 2, 4>}, {transform_indices = @transform_7, window_bounds = array<i64: 2, 8>}]} {
    %c0 = arith.constant 0 : index
    %c0_0 = arith.constant 0 : index
    %0 = vector.load %arg1[%c0, %c0_0] : memref<2x4xf32, #tpu.memory_space<vmem>>, vector<2x4xf32>
    %c0_1 = arith.constant 0 : index
    %c0_2 = arith.constant 0 : index
    %c0_3 = arith.constant 0 : index
    %1 = vector.load %arg2[%c0_1, %c0_2, %c0_3] : memref<2x8x4xf32, #tpu.memory_space<vmem>>, vector<2x8x4xf32>
    %c0_4 = arith.constant 0 : index
    %c0_5 = arith.constant 0 : index
    %2 = vector.load %arg3[%c0_4, %c0_5] : memref<4x4xf32, #tpu.memory_space<vmem>>, vector<4x4xf32>
    %cst = arith.constant dense<0.000000e+00> : vector<2x4xf32>
    %3 = tpu.matmul %0, %2, %cst {dimension_numbers = #tpu.dot_dimension_numbers<[1], [0], [0], [1], [0, 0, 1, 1], [], []>} : vector<2x4xf32>, vector<4x4xf32>, vector<2x4xf32> -> vector<2x4xf32>
    %c0_6 = arith.constant 0 : index
    %c0_7 = arith.constant 0 : index
    %4 = vector.load %arg5[%c0_6, %c0_7] : memref<1x4xf32, #tpu.memory_space<vmem>>, vector<1x4xf32>
    %5 = vector.broadcast %4 : vector<1x4xf32> to vector<2x4xf32>
    %6 = arith.addf %3, %5 : vector<2x4xf32>
    %7 = vector.shape_cast %1 : vector<2x8x4xf32> to vector<16x4xf32>
    %c0_8 = arith.constant 0 : index
    %c0_9 = arith.constant 0 : index
    %8 = vector.load %arg4[%c0_8, %c0_9] : memref<4x4xf32, #tpu.memory_space<vmem>>, vector<4x4xf32>
    %cst_10 = arith.constant dense<0.000000e+00> : vector<16x4xf32>
    %9 = tpu.matmul %7, %8, %cst_10 {dimension_numbers = #tpu.dot_dimension_numbers<[1], [0], [0], [1], [0, 0, 1, 1], [], []>} : vector<16x4xf32>, vector<4x4xf32>, vector<16x4xf32> -> vector<16x4xf32>
    %10 = vector.shape_cast %9 : vector<16x4xf32> to vector<2x8x4xf32>
    %11 = vector.shape_cast %6 : vector<2x4xf32> to vector<2x1x4xf32>
    %12 = vector.broadcast %11 : vector<2x1x4xf32> to vector<2x8x4xf32>
    %13 = arith.addf %10, %12 : vector<2x8x4xf32>
    %14 = math.tanh %13 : vector<2x8x4xf32>
    %c0_11 = arith.constant 0 : index
    %c0_12 = arith.constant 0 : index
    %15 = vector.load %arg6[%c0_11, %c0_12] : memref<1x4xf32, #tpu.memory_space<vmem>>, vector<1x4xf32>
    %16 = vector.shape_cast %15 : vector<1x4xf32> to vector<1x1x4xf32>
    %17 = vector.broadcast %16 : vector<1x1x4xf32> to vector<2x8x4xf32>
    %18 = arith.mulf %14, %17 : vector<2x8x4xf32>
    %cst_13 = arith.constant dense<0.000000e+00> : vector<2x8xf32>
    %19 = vector.multi_reduction <add>, %18, %cst_13 [2] : vector<2x8x4xf32> to vector<2x8xf32>
    %20 = tpu.iota {dimensions = array<i32: 1>} : vector<2x8xi32>
    %c5_i32 = arith.constant 5 : i32
    %21 = vector.broadcast %c5_i32 : i32 to vector<2x8xi32>
    %22 = arith.cmpi slt, %20, %21 : vector<2x8xi32>
    %cst_14 = arith.constant -1.000000e+30 : f32
    %23 = vector.broadcast %cst_14 : f32 to vector<2x8xf32>
    %24 = arith.select %22, %19, %23 : vector<2x8xi1>, vector<2x8xf32>
    %cst_15 = arith.constant dense<0xFF800000> : vector<2xf32>
    %25 = vector.multi_reduction <maximumf>, %24, %cst_15 [1] : vector<2x8xf32> to vector<2xf32>
    %26 = vector.shape_cast %25 : vector<2xf32> to vector<2x1xf32>
    %27 = vector.broadcast %26 : vector<2x1xf32> to vector<2x8xf32>
    %28 = arith.subf %24, %27 : vector<2x8xf32>
    %29 = math.exp %28 : vector<2x8xf32>
    %cst_16 = arith.constant dense<0.000000e+00> : vector<2xf32>
    %30 = vector.multi_reduction <add>, %29, %cst_16 [1] : vector<2x8xf32> to vector<2xf32>
    %31 = vector.shape_cast %30 : vector<2xf32> to vector<2x1xf32>
    %32 = vector.broadcast %31 : vector<2x1xf32> to vector<2x8xf32>
    %33 = arith.divf %29, %32 : vector<2x8xf32>
    %34 = vector.shape_cast %33 : vector<2x8xf32> to vector<2x8x1xf32>
    %35 = vector.broadcast %34 : vector<2x8x1xf32> to vector<2x8x4xf32>
    %36 = arith.mulf %35, %1 : vector<2x8x4xf32>
    %cst_17 = arith.constant dense<0.000000e+00> : vector<2x4xf32>
    %37 = vector.multi_reduction <add>, %36, %cst_17 [1] : vector<2x8x4xf32> to vector<2x4xf32>
    %c0_18 = arith.constant 0 : index
    %c0_19 = arith.constant 0 : index
    %38 = vector.load %arg8[%c0_18, %c0_19] : memref<2x8xf32, #tpu.memory_space<vmem>>, vector<2x8xf32>
    tpu.vector_store %arg8[%c0_18, %c0_19], %33 {strides = array<i32>} : memref<2x8xf32, #tpu.memory_space<vmem>>, vector<2x8xf32>,
    %c0_20 = arith.constant 0 : index
    %c0_21 = arith.constant 0 : index
    %39 = vector.load %arg7[%c0_20, %c0_21] : memref<2x4xf32, #tpu.memory_space<vmem>>, vector<2x4xf32>
    tpu.vector_store %arg7[%c0_20, %c0_21], %37 {strides = array<i32>} : memref<2x4xf32, #tpu.memory_space<vmem>>, vector<2x4xf32>,
    return
  }
  func.func @transform_0(%arg0: i32) -> (i32, i32) {
    %c0_i32 = arith.constant 0 : i32
    %c0_i32_0 = arith.constant 0 : i32
    return %arg0, %c0_i32 : i32, i32
  }
  func.func @transform_1(%arg0: i32) -> (i32, i32, i32) {
    %c0_i32 = arith.constant 0 : i32
    %c0_i32_0 = arith.constant 0 : i32
    %c0_i32_1 = arith.constant 0 : i32
    return %arg0, %c0_i32, %c0_i32_0 : i32, i32, i32
  }
  func.func @transform_2(%arg0: i32) -> (i32, i32) {
    %c0_i32 = arith.constant 0 : i32
    %c0_i32_0 = arith.constant 0 : i32
    %c0_i32_1 = arith.constant 0 : i32
    return %c0_i32, %c0_i32_0 : i32, i32
  }
  func.func @transform_3(%arg0: i32) -> (i32, i32) {
    %c0_i32 = arith.constant 0 : i32
    %c0_i32_0 = arith.constant 0 : i32
    %c0_i32_1 = arith.constant 0 : i32
    return %c0_i32, %c0_i32_0 : i32, i32
  }
  func.func @transform_4(%arg0: i32) -> (i32, i32) {
    %c0_i32 = arith.constant 0 : i32
    %c0_i32_0 = arith.constant 0 : i32
    %c0_i32_1 = arith.constant 0 : i32
    return %c0_i32, %c0_i32_0 : i32, i32
  }
  func.func @transform_5(%arg0: i32) -> (i32, i32) {
    %c0_i32 = arith.constant 0 : i32
    %c0_i32_0 = arith.constant 0 : i32
    %c0_i32_1 = arith.constant 0 : i32
    return %c0_i32, %c0_i32_0 : i32, i32
  }
  func.func @transform_6(%arg0: i32) -> (i32, i32) {
    %c0_i32 = arith.constant 0 : i32
    %c0_i32_0 = arith.constant 0 : i32
    return %arg0, %c0_i32 : i32, i32
  }
  func.func @transform_7(%arg0: i32) -> (i32, i32) {
    %c0_i32 = arith.constant 0 : i32
    %c0_i32_0 = arith.constant 0 : i32
    return %arg0, %c0_i32 : i32, i32
  }
}

</mosaic_0001>

<bundles_post_ra>
// kernel: tpu_custom_call.1
= control target key start
LH: loop header
LB: loop body
LE: loop exit
PB: predicated region body
PF: predicated region fallthrough
CT: control target
= control target key end

     0   :  { %13 = vsyncpa [#allocation3], 0  ;;  %vm42_vm0 = vcmask 1043456   ;;  %vm38_vm1 = vcmask 31744   ;;  %v430_v1 = vmov 0.0   ;;  %vm431_vm2 = vmmov 0   ;;  %s540_s0 = inlined_call_operand.vmem [shape: f32[2,4], index: 0, kind: input, shape index: {}]   ;;  %s541_s1 = inlined_call_operand.vmem [shape: f32[2,8,4], index: 1, kind: input, shape index: {}]   ;;  %s542_s2 = inlined_call_operand.vmem [shape: f32[4,4], index: 2, kind: input, shape index: {}]   ;;  %s543_s3 = inlined_call_operand.vmem [shape: f32[4,4], index: 3, kind: input, shape index: {}]   ;;  %s544_s4 = inlined_call_operand.vmem [shape: f32[1,4], index: 4, kind: input, shape index: {}]   ;;  %s545_s5 = inlined_call_operand.vmem [shape: f32[1,4], index: 5, kind: input, shape index: {}]   ;;  %s546_s6 = inlined_call_operand.hbm [shape: f32[2,4], index: 6, kind: output, shape index: {0}]   ;;  %s547_s7 = inlined_call_operand.hbm [shape: f32[2,8], index: 7, kind: output, shape index: {1}]  }
   0x1   :  { %v30_v0 = vld [vmem:[%s542_s2] sm:$0xf]  ;;  %359 = vmatprep.subr.mxu0 %v430_v1  ;;  %361 = vmatprep.mubr.msk.f32.mxu0 %vm431_vm2, %v430_v1  ;;  %v492_v5 = vld [vmem:[%s541_s1 + $0x8] sm:$0xff] }
   0x2   :  { %v27_v2 = vld [vmem:[%s540_s0] sm:$0x3]  ;;  %360 = vmatpush3.msk.msra.mxu0 %vm42_vm0, %v30_v0 }
   0x3   :  { %v116_v3 = vld [vmem:[%s543_s3] sm:$0xf] }
   0x4   :  { %v487_v4 = vld [vmem:[%s541_s1] sm:$0xff]  ;;  %364 = vmatprep.subr.msk.mxu1 %vm42_vm0, %v116_v3 }
   0x5   :  { %14 = vsyncpa [#allocation5], 0  ;;  %362 = vmatmul.mubr.msk.f32.vlgmr.msra.gmra.mrb[0].mxu0 %vm38_vm1, %v27_v2  ;;  %365 = vmatpush3.msk.msra.mxu1 %vm42_vm0, %v116_v3  ;;  %v432_v6 = vmov 1966171168   ;;  %v205_v8 = vlaneseq  ;;  %v347_v11 = vld [vmem:[%s544_s4] ss:$0 sm:$0xff] }
   0x6   :  { %366 = vmatprep.mubr.msk.f32.mxu1 %vm38_vm1, %v487_v4  ;;  %v203_v7 = vunpack.c.l.s4 %v432_v6  ;;  %v353_v27 = vld [vmem:[%s545_s5] ss:$0 sm:$0xff]  ;;  %vm266_vm3 = vcmask 1041409   ;;  %vm270_vm5 = vcmask 58368   ;;  %s433_s4 = smov [#allocation4]  }
   0x7   :  { %367 = vmatmul.mubr.msk.f32.vlgmr.msra.gmra.mrb[0].mxu1 %vm38_vm1, %v492_v5  ;;  %v206_v10 = vshrl.u32 %v205_v8, 7  ;;  %v254_v34 = vand.u32 127, %v205_v8  ;;  %s335_s5 = sshll.u32 %s433_s4, 4  ;;  %s336_s5 = int_to_ptr.vmem [resolvable:$true] %s335_s5 }
   0x8   :  { %v204_v9 = vunpack.c.0.s8 %v203_v7  ;;  %s382_s11 = scalar_lea.vmem %s336_s5, 32  ;;  %p387_p1 = scmp.lt.s32.totalorder %s336_s5, %s336_s5 }
   0x9   :  { %v226_v18 = vsub.s32 0, %v206_v10  ;;  %v260_v36 = vsub.s32 %v254_v34, %v206_v10  ;;  %vm255_vm4 = vcmp.lt.s32.totalorder %v254_v34, 5  ;;  %v291_v49 = vsub.s32 1, %v206_v10  ;;  %p383_p0 = scmp.ne.s32.totalorder %s336_s5, %s382_s11  ;;  %p388_p2 = scmp.lt.s32.totalorder %s382_s11, %s382_s11 }
   0xa   :  { %v207_v12 = vsub.s32 %v204_v9, %v206_v10 }
   0xb   :  { %p389_p3 = por %p388_p2, %p387_p1 }
   0xd   :  { %p390_p4 = pnand %p389_p3, %p383_p0 }
  0xd8   :  { %v112_v13 = vpop.f32.mrb[0].mxu0 }
  0xd9   :  { %v113_v14 = vadd.f32 %v347_v11, %v112_v13  ;;  %v363_v15 = vpop.f32.mrb[1].mxu0 }
  0xda   :  { %v368_v16 = vpop.f32.mrb[0].mxu1 }
  0xdb   :  { %v208_v17 = vrot.slane %v113_v14, %v207_v12  ;;  %v192_v19 = vpop.f32.mrb[1].mxu1 }
  0xdd   :  { %v209_v20 = vcombine.high %v208_v17, %v208_v17  ;;  %v216_v21 = vrot.slane %v208_v17, %v207_v12 }
  0xdf   :  { %v223_v22 = vrot.slane %v209_v20, %v207_v12  ;;  %v227_v23 = vrot.slane %v216_v21, %v226_v18 }
  0xe1   :  { %v231_v24 = vrot.slane %v223_v22, %v226_v18  ;;  %v234_v25 = vadd.f32 %v227_v23, %v192_v19 }
  0xe3   :  { %v235_v26 = vadd.f32 %v368_v16, %v231_v24  ;;  %374 = vtanh.f32 %v234_v25 }
  0xe5   :  { %376 = vtanh.f32 %v235_v26 }
  0xed   :  { %v375_v28 = vpop.eup %374 }
  0xee   :  { %v245_v29 = vmul.f32 %v375_v28, %v353_v27 }
  0xef   :  { %v377_v30 = vpop.eup %376 }
  0xf0   :  { %v247_v31 = vsel %vm38_vm1, %v245_v29, 0.0  ;;  %v246_v32 = vmul.f32 %v377_v30, %v353_v27 }
  0xf1   :  { %248 = vadd.xlane.f32.xlu0 %v247_v31 }
  0xf2   :  { %v250_v33 = vsel %vm38_vm1, %v246_v32, 0.0 }
  0xf5   :  { %251 = vadd.xlane.f32.xlu0 %v250_v33 }
 0x17e   :  { %v249_v35 = vpop.xlane.xlu0 %248 }
 0x17f   :  { %v261_v38 = vrot.slane %v249_v35, %v260_v36 }
 0x182   :  { %v252_v37 = vpop.xlane.xlu0 %251 }
 0x183   :  { %v265_v39 = vrot.slane %v252_v37, %v260_v36 }
 0x185   :  { %v267_v40 = vsel %vm266_vm3, %v265_v39, %v261_v38 }
 0x186   :  { %v269_v41 = vsel %vm255_vm4, %v267_v40, -1e+30 }
 0x187   :  { %v271_v42 = vsel %vm270_vm5, %v269_v41, -inf }
 0x188   :  { %272 = vmax.xlane.f32.xlu1 %v271_v42 }
 0x215   :  { %v273_v43 = vpop.xlane.xlu1 %272 }
 0x216   :  { %v274_v44 = vsub.f32 %v269_v41, %v273_v43 }
 0x218   :  { %v275_v45 = vmul.f32 1.442695, %v274_v44 }
 0x21a   :  { %378 = vpow2.f32 %v275_v45 }
 0x224   :  { %v379_v46 = vpop.eup %378 }
 0x225   :  { %v277_v47 = vsel %vm270_vm5, %v379_v46, 0.0 }
 0x226   :  { %278 = vadd.xlane.f32.xlu1 %v277_v47 }
 0x2b3   :  { %v279_v48 = vpop.xlane.xlu1 %278 }
 0x2b4   :  { %380 = vrcp.f32 %v279_v48 }
 0x2be   :  { %v381_v50 = vpop.eup %380 }
 0x2bf   :  { %v281_v51 = vmul.f32 %v381_v50, %v379_v46 }
 0x2c1   :  { %v292_v52 = vrot.slane %v281_v51, %v291_v49  ;;  %312 = vst.msk [vmem:[#allocation4] sm:$0x3] %vm270_vm5, %v281_v51  ;;  %v285_v53 = vrot.slane %v281_v51, %v226_v18 }
 0x2c3   :  { %294 = vbcast.lane.b32.xlu1 %v292_v52, 256  ;;  %287 = vbcast.lane.b32.xlu0 %v285_v53, 256 }
 0x2c4   :  { %393 = shalt.err (!%p390_p4)
}
 0x2c5   :  { %s394_s14 = scalar_lea.hbm %s547_s7, 32 }
 0x2c6   :  { %p395_p5 = scmp.ne.s32.totalorder %s547_s7, %s394_s14  ;;  %p398_p6 = scmp.lt.u32.totalorder %s394_s14, %s547_s7 }
 0x2c8   :  { %p400_p7 = pnand %p398_p6, %p395_p5 }
 0x2ca   :  { %403 = shalt.err (!%p400_p7)
}
 0x2cb   :  { %338 = dma.vmem_to_hbm [thread:$0]  %s336_s5, 32, %s547_s7, [#allocation5]   ;;  %vm317_vm6 = vcmask 25600  }
 0x2cc   :  { %s434_s7 = smov [#allocation2]  }
 0x2cd   :  { %s325_s21 = sshll.u32 %s434_s7, 4  ;;  %s326_s21 = int_to_ptr.vmem [resolvable:$true] %s325_s21 }
 0x2ce   :  { %s404_s22 = scalar_lea.vmem %s326_s21, 32  ;;  %p409_p9 = scmp.lt.s32.totalorder %s326_s21, %s326_s21 }
 0x2cf   :  { %p405_p8 = scmp.ne.s32.totalorder %s326_s21, %s404_s22  ;;  %p410_p10 = scmp.lt.s32.totalorder %s404_s22, %s404_s22 }
 0x2d1   :  { %p411_p11 = por %p410_p10, %p409_p9 }
 0x2d3   :  { %p412_p12 = pnand %p411_p11, %p405_p8 }
 0x335   :  { %v295_v54 = vpop.permute.xlu1 %294  ;;  %v288_v55 = vpop.permute.xlu0 %287 }
 0x336   :  { %v297_v56 = vmul.f32 %v295_v54, %v492_v5  ;;  %v296_v57 = vmul.f32 %v288_v55, %v487_v4 }
 0x338   :  { %v305_v58 = vsel %vm38_vm1, %v297_v56, 0.0  ;;  %v298_v59 = vsel %vm38_vm1, %v296_v57, 0.0 }
 0x339   :  { %v306_v60 = vrot.slane %v305_v58, 4  ;;  %v299_v61 = vrot.slane %v298_v59, 4 }
 0x33b   :  { %v307_v62 = vadd.f32 %v306_v60, %v305_v58  ;;  %v300_v63 = vadd.f32 %v299_v61, %v298_v59 }
 0x33d   :  { %v308_v0 = vrot.slane %v307_v62, 2  ;;  %v301_v1 = vrot.slane %v300_v63, 2 }
 0x33f   :  { %v309_v2 = vadd.f32 %v308_v0, %v307_v62  ;;  %v302_v3 = vadd.f32 %v301_v1, %v300_v63 }
 0x341   :  { %v310_v6 = vrot.slane %v309_v2, 1  ;;  %v303_v7 = vrot.slane %v302_v3, 1 }
 0x343   :  { %v304_v8 = vadd.f32 %v303_v7, %v302_v3  ;;  %v311_v5 = vadd.f32 %v310_v6, %v309_v2 }
 0x345   :  { %v315_v4 = vsel %vm266_vm3, %v311_v5, %v304_v8 }
 0x346   :  { %318 = vst.msk [vmem:[#allocation2] sm:$0x3] %vm317_vm6, %v315_v4 }
 0x347   :  { %415 = shalt.err (!%p412_p12)
}
 0x348   :  { %s416_s25 = scalar_lea.hbm %s546_s6, 32 }
 0x349   :  { %p417_p13 = scmp.ne.s32.totalorder %s546_s6, %s416_s25  ;;  %p420_p0 = scmp.lt.u32.totalorder %s416_s25, %s546_s6 }
 0x34b   :  { %p422_p1 = pnand %p420_p0, %p417_p13 }
 0x34d   :  { %425 = shalt.err (!%p422_p1)
}
 0x34e   :  { %328 = dma.vmem_to_hbm [thread:$0]  %s326_s21, 32, %s546_s6, [#allocation3]  }
 0x34f   :  { %426 = dma.done.wait [#allocation3], 32  }
 0x350   :  { %427 = vsyncadd [#allocation3], 4294967264 }
 0x351   :  { %428 = dma.done.wait [#allocation5], 32  }
 0x352   :  { %429 = vsyncadd [#allocation5], 4294967264 }
 0x353   :  { %345 = vsyncpa [#allocation3], 1 }
 0x354   :  { %346 = vsyncpa [#allocation5], 1 }

</bundles_post_ra>
